<compile_context>
chip_gen: v7x
topology: tpu7x:2x2x1
jax: 0.10.0
libtpu: 0.0.40
codegen_flags: <defaults>
</compile_context>

<pallas_src>
import functools

import numpy as np
import jax
import jax.numpy as jnp
from jax.experimental import pallas as pl
from jax.experimental.pallas import tpu as pltpu


# ----------------------------- parameter construction -----------------------------

def make_rotary_tables(rot_dim: int, table_len: int):
    """Equivalent of GLMPositionalEmbedding.generate_rotary_embedding.

    `rot_dim` corresponds to the `dim` constructor argument of the PyTorch module
    (== head_dim // 2, required for the broadcast in forward() to be valid)."""
    inv_freq = 1.0 / (10000.0 ** (np.arange(0, rot_dim, 2, dtype=np.float32) / rot_dim))
    t = np.arange(table_len, dtype=np.float32)[:, None] * inv_freq[None, :]   # [L, rot_dim/2]
    v = np.concatenate([t, t], axis=-1)                                       # [L, rot_dim]
    return jnp.asarray(np.cos(v)), jnp.asarray(np.sin(v))                     # cos, sin


# ----------------------------- roll-convention probe -----------------------------

@functools.lru_cache(maxsize=None)
def _pltpu_roll_matches_jnp() -> bool:
    """One-off tiny probe pinning down pltpu.roll's shift direction vs jnp.roll."""
    def probe(x_ref, o_ref):
        o_ref[...] = pltpu.roll(x_ref[...], 1, axis=1)
    x = jnp.arange(8 * 128, dtype=jnp.float32).reshape(8, 128)
    y = pl.pallas_call(probe, out_shape=jax.ShapeDtypeStruct((8, 128), jnp.float32))(x)
    return bool(jnp.array_equal(y, jnp.roll(x, 1, axis=1)))


# ----------------------------- Pallas kernel -----------------------------

def glm_rope_kernel(q_ref, k_ref, cos_ref, sina_ref, sinb_ref, qo_ref, ko_ref,
                    *, shift_a, shift_b):
    # q_ref/k_ref: [TS, B, H, D]; cos/sinA/sinB: [TS, B, 1, D] (broadcast over heads).
    cos = cos_ref[...]
    sa = sina_ref[...]
    sb = sinb_ref[...]

    def rope(x):                                   # x: [TS, B, H, D]
        ra = pltpu.roll(x, shift_a, axis=3)        # quarters -> (x1, x2, x3, x0)
        rb = pltpu.roll(x, shift_b, axis=3)        # quarters -> (x3, x0, x1, x2)
        return x * cos + ra * sa + rb * sb         # signs are folded into sa/sb

    qo_ref[...] = rope(q_ref[...]).astype(qo_ref.dtype)
    ko_ref[...] = rope(k_ref[...]).astype(ko_ref.dtype)


# ----------------------------- wrapper -----------------------------

def _pick_seq_block(seq_len: int, cap: int = 256) -> int:
    for ts in (512, 256, 128, 64, 32, 16, 8, 4, 2, 1):
        if ts <= cap and seq_len % ts == 0:
            return ts
    return 1


def glm_positional_embedding(qs, ks, position_ids, cos_tab, sin_tab, *, block_s: int = 256):
    """qs, ks: [S, B, H, D]; position_ids: [B, 2, S] int32; cos/sin tables: [L, D//2]."""
    S, B, H, D = qs.shape
    L, Dh = cos_tab.shape
    assert D == 2 * Dh, "head_dim must be twice the rotary table width"
    assert Dh % 2 == 0
    Dq = Dh // 2
    dtype = qs.dtype

    # ---- wrapper-side gather of the (tiny) cos/sin tables; signs folded for the rolls ----
    p1 = position_ids[:, 0, :].T              # [S, B]
    p2 = position_ids[:, 1, :].T
    c1 = jnp.take(cos_tab, p1, axis=0)        # [S, B, Dh]  (OOB indices clamp, never read garbage)
    c2 = jnp.take(cos_tab, p2, axis=0)
    s1 = jnp.take(sin_tab, p1, axis=0)
    s2 = jnp.take(sin_tab, p2, axis=0)

    zq = jnp.zeros((S, B, Dq), dtype=s1.dtype)
    cos_full = jnp.concatenate([c1, c2], axis=-1)                                    # (c1, c1, c2, c2)
    # sinA multiplies the roll producing quarters (x1, x2, x3, x0): active (negated) at quarters 0, 2.
    sin_a = jnp.concatenate([-s1[..., :Dq], zq, -s2[..., :Dq], zq], axis=-1)
    # sinB multiplies the roll producing quarters (x3, x0, x1, x2): active at quarters 1, 3.
    sin_b = jnp.concatenate([zq, s1[..., Dq:], zq, s2[..., Dq:]], axis=-1)

    cos_full = cos_full[:, :, None, :].astype(dtype)   # [S, B, 1, D]
    sin_a = sin_a[:, :, None, :].astype(dtype)
    sin_b = sin_b[:, :, None, :].astype(dtype)

    if _pltpu_roll_matches_jnp():              # jnp.roll convention
        shift_a, shift_b = D - Dq, Dq
    else:                                      # opposite rotate direction: swap the two rolls
        shift_a, shift_b = Dq, D - Dq

    TS = _pick_seq_block(S, cap=block_s)
    grid = (S // TS,)
    qk_spec = pl.BlockSpec((TS, B, H, D), lambda i: (i, 0, 0, 0))
    cs_spec = pl.BlockSpec((TS, B, 1, D), lambda i: (i, 0, 0, 0))

    kernel = functools.partial(glm_rope_kernel, shift_a=shift_a, shift_b=shift_b)
    q_out, k_out = pl.pallas_call(
        kernel,
        grid=grid,
        in_specs=[qk_spec, qk_spec, cs_spec, cs_spec, cs_spec],
        out_specs=[qk_spec, qk_spec],
        out_shape=(jax.ShapeDtypeStruct((S, B, H, D), qs.dtype),
                   jax.ShapeDtypeStruct((S, B, H, D), ks.dtype)),
        compiler_params=pltpu.CompilerParams(
            dimension_semantics=("parallel",)),
    )(qs, ks, cos_full, sin_a, sin_b)
    return q_out, k_out


# ----------------------------- pure-JAX reference -----------------------------

def ref_forward(qs, ks, position_ids, cos_tab, sin_tab):
    S, B, H, D = qs.shape
    Dh = D // 2
    p1 = position_ids[:, 0, :].T
    p2 = position_ids[:, 1, :].T

    def rot_half(x):
        x1, x2 = jnp.split(x, 2, axis=-1)
        return jnp.concatenate([-x2, x1], axis=-1)

    def apply(x, p):
        cos = cos_tab[p][:, :, None, :]
        sin = sin_tab[p][:, :, None, :]
        return x * cos + rot_half(x) * sin

    q1, q2 = qs[..., :Dh], qs[..., Dh:]
    k1, k2 = ks[..., :Dh], ks[..., Dh:]
    q = jnp.concatenate([apply(q1, p1), apply(q2, p2)], axis=-1)
    k = jnp.concatenate([apply(k1, p1), apply(k2, p2)], axis=-1)
    return q, k


# ----------------------------- driver -----------------------------

if __name__ == "__main__":
    # Scaled-down GLM-6B-like shapes: head_dim = 128 keeps the lane dim dense,
    # n_heads = 8 fills the (8, 128) vreg tile exactly; S = 512 gives a 2-step grid at TS = 256.
    S, B, H, D = 512, 2, 8, 128
    ROT_DIM = D // 2                  # == `dim` argument of the PyTorch module

    key = jax.random.PRNGKey(0)
    kq, kk, kp = jax.random.split(key, 3)
    qs = jax.random.normal(kq, (S, B, H, D), dtype=jnp.float32)
    ks = jax.random.normal(kk, (S, B, H, D), dtype=jnp.float32)
    position_ids = jax.random.randint(kp, (B, 2, S), 0, 64, dtype=jnp.int32)

    # Deterministic "parameters": cos/sin tables (default length 64, as in __init__).
    # TODO(synk): dynamic table regrowth inside a jitted region is not expressible; done host-side.
    max_pos = int(jnp.max(position_ids))
    table_len = 64
    if max_pos + 1 > table_len:
        table_len = 2 * (max_pos + 1)   # mirrors the dynamic regeneration in forward()
    cos_tab, sin_tab = make_rotary_tables(ROT_DIM, table_len)

    _ = _pltpu_roll_matches_jnp()       # warm the tiny probe kernel outside of jit

    fwd = jax.jit(functools.partial(glm_positional_embedding,
                                    cos_tab=cos_tab, sin_tab=sin_tab))
    q_out, k_out = fwd(qs, ks, position_ids)
    q_out, k_out = jax.block_until_ready((q_out, k_out))

    q_ref, k_ref = ref_forward(qs, ks, position_ids, cos_tab, sin_tab)
    np.testing.assert_allclose(np.asarray(q_out), np.asarray(q_ref), rtol=1e-5, atol=1e-5)
    np.testing.assert_allclose(np.asarray(k_out), np.asarray(k_ref), rtol=1e-5, atol=1e-5)

    print("KERNEL_OK")
</pallas_src>

<mosaic_0001>
module attributes {stable_mosaic.version = 11 : i64} {
  func.func @probe(%arg0: memref<8x128xf32, #tpu.memory_space<vmem>>, %arg1: memref<8x128xf32, #tpu.memory_space<vmem>>) attributes {dimension_semantics = [], scalar_prefetch = 0 : i64, scratch_operands = 0 : i64, tpu.core_type = #tpu.core_type<tc>} {
    %c0 = arith.constant 0 : index
    %c0_0 = arith.constant 0 : index
    %0 = vector.load %arg0[%c0, %c0_0] : memref<8x128xf32, #tpu.memory_space<vmem>>, vector<8x128xf32>
    %c1_i32 = arith.constant 1 : i32
    %1 = tpu.dynamic_rotate %0 by %c1_i32 dim 1 : vector<8x128xf32>, i32 -> vector<8x128xf32>
    %c0_1 = arith.constant 0 : index
    %c0_2 = arith.constant 0 : index
    %2 = vector.load %arg1[%c0_1, %c0_2] : memref<8x128xf32, #tpu.memory_space<vmem>>, vector<8x128xf32>
    tpu.vector_store %arg1[%c0_1, %c0_2], %1 {strides = array<i32>} : memref<8x128xf32, #tpu.memory_space<vmem>>, vector<8x128xf32>,
    return
  }
}

</mosaic_0001>

<bundles_post_ra>
// kernel: tpu_custom_call.1
= control target key start
LH: loop header
LB: loop body
LE: loop exit
PB: predicated region body
PF: predicated region fallthrough
CT: control target
= control target key end

     0   :  { %6 = vsyncpa [#allocation3], 0  ;;  %s128_s0 = inlined_call_operand.hbm [shape: f32[8,128], index: 0, kind: input, shape index: {}]   ;;  %s129_s1 = inlined_call_operand.hbm [shape: f32[8,128], index: 1, kind: output, shape index: {}]  }
   0x1   :  { %7 = vsyncpa [#allocation4], 0  ;;  %s91_s6 = smov [#allocation2]   ;;  %s43_s10 = scalar_lea.hbm %s128_s0, 128 }
   0x2   :  { %s14_s7 = sshll.u32 %s91_s6, 4  ;;  %p44_p0 = scmp.ne.s32.totalorder %s128_s0, %s43_s10  ;;  %s15_s7 = int_to_ptr.vmem [resolvable:$true] %s14_s7 }
   0x3   :  { %p47_p1 = scmp.lt.u32.totalorder %s43_s10, %s128_s0 }
   0x5   :  { %p49_p2 = pnand %p47_p1, %p44_p0 }
   0x7   :  { %52 = shalt.err (!%p49_p2)
}
   0x8   :  { %s53_s15 = scalar_lea.vmem %s15_s7, 128  ;;  %p58_p4 = scmp.lt.s32.totalorder %s15_s7, %s15_s7 }
   0x9   :  { %p54_p3 = scmp.ne.s32.totalorder %s15_s7, %s53_s15  ;;  %p59_p5 = scmp.lt.s32.totalorder %s53_s15, %s53_s15 }
   0xb   :  { %p60_p6 = por %p59_p5, %p58_p4 }
   0xd   :  { %p61_p7 = pnand %p60_p6, %p54_p3 }
   0xf   :  { %64 = shalt.err (!%p61_p7)
}
  0x10   :  { %17 = dma.hbm_to_vmem [thread:$0]  %s128_s0, 128, %s15_s7, [#allocation3]  }
  0x11   :  { %87 = dma.done.wait [#allocation3], 128  }
  0x12   :  { %88 = vsyncadd [#allocation3], 4294967168  ;;  %v21_v0 = vld [vmem:[#allocation2] sm:$0xff]  ;;  %s92_s18 = smov 1   ;;  %s93_s19 = smov [#allocation5]  }
  0x13   :  { %22 = vrot.lane.b32.xlu0 %v21_v0, %s92_s18  ;;  %s31_s20 = sshll.u32 %s93_s19, 4  ;;  %s32_s20 = int_to_ptr.vmem [resolvable:$true] %s31_s20 }
  0x14   :  { %s65_s21 = scalar_lea.vmem %s32_s20, 128  ;;  %p70_p9 = scmp.lt.s32.totalorder %s32_s20, %s32_s20 }
  0x15   :  { %p66_p8 = scmp.ne.s32.totalorder %s32_s20, %s65_s21  ;;  %p71_p10 = scmp.lt.s32.totalorder %s65_s21, %s65_s21 }
  0x17   :  { %p72_p11 = por %p71_p10, %p70_p9 }
  0x19   :  { %p73_p12 = pnand %p72_p11, %p66_p8 }
  0x85   :  { %v23_v1 = vpop.permute.xlu0 %22 }
  0x86   :  { %24 = vst [vmem:[#allocation5] sm:$0xff] %v23_v1 }
  0x87   :  { %76 = shalt.err (!%p73_p12)
}
  0x88   :  { %s77_s0 = scalar_lea.hbm %s129_s1, 128 }
  0x89   :  { %p78_p13 = scmp.ne.s32.totalorder %s129_s1, %s77_s0  ;;  %p81_p0 = scmp.lt.u32.totalorder %s77_s0, %s129_s1 }
  0x8b   :  { %p83_p1 = pnand %p81_p0, %p78_p13 }
  0x8d   :  { %86 = shalt.err (!%p83_p1)
}
  0x8e   :  { %34 = dma.vmem_to_hbm [thread:$0]  %s32_s20, 128, %s129_s1, [#allocation4]  }
  0x8f   :  { %89 = dma.done.wait [#allocation4], 128  }
  0x90   :  { %90 = vsyncadd [#allocation4], 4294967168 }
  0x91   :  { %38 = vsyncpa [#allocation3], 1 }
  0x92   :  { %39 = vsyncpa [#allocation4], 1 }

</bundles_post_ra>
